<compile_context>
chip_gen: v7x
topology: tpu7x:2x2x1
jax: 0.10.0
libtpu: 0.0.40
codegen_flags: <defaults>
</compile_context>

<pallas_src>
import functools

import jax
import jax.numpy as jnp
import numpy as np
from jax.experimental import pallas as pl
from jax.experimental.pallas import tpu as pltpu


# ----------------------------------------------------------------------------
# Fast path: grid-less, whole-array blocks (small shapes).
# ----------------------------------------------------------------------------
def _dino_loss_small_kernel(inv_temp_ref, student_ref, teacher_ref, center_ref,
                            loss_ref, new_center_ref, *,
                            batch_per_crop, ncrops, inv_student_temp,
                            center_momentum):
    B = batch_per_crop
    inv_temp = inv_temp_ref[0, 0]

    teacher = teacher_ref[...].astype(jnp.float32)            # (2B, D)
    center = center_ref[...].astype(jnp.float32)              # (1, D)

    # ---- teacher: softmax((teacher - center) * inv_temp, dim=-1) ----
    logits_t = (teacher - center) * inv_temp
    m_t = jnp.max(logits_t, axis=-1, keepdims=True)
    e_t = jnp.exp(logits_t - m_t)
    q_all = e_t * pl.reciprocal(jnp.sum(e_t, axis=-1, keepdims=True),
                                approx=False)                 # (2B, D)

    # ---- student: log_softmax(student * inv_student_temp, dim=-1) ----
    s = student_ref[...].astype(jnp.float32) * inv_student_temp
    m_s = jnp.max(s, axis=-1, keepdims=True)
    z = s - m_s
    lse = jnp.log(jnp.sum(jnp.exp(z), axis=-1, keepdims=True))
    log_p = z - lse                                           # (ncrops*B, D)

    # ---- collapsed cross-entropy pair loop ----
    l_sum = log_p[0:B, :]
    for v in range(1, ncrops):
        l_sum = l_sum + log_p[v * B:(v + 1) * B, :]

    per_row = jnp.zeros((B, 1), jnp.float32)
    for iq in range(2):
        q = q_all[iq * B:(iq + 1) * B, :]
        l_cross = l_sum - log_p[iq * B:(iq + 1) * B, :]
        per_row = per_row + jnp.sum(-q * l_cross, axis=-1, keepdims=True)

    n_terms = 2 * (ncrops - 1)
    loss_ref[0, 0] = jnp.sum(per_row) * (1.0 / float(B * n_terms))

    # ---- EMA center update (world_size == 1) ----
    # TODO(synk): multi-host DINO all-reduces batch_center across devices;
    # no cross-device collective is emitted here (single-device semantics).
    batch_center = jnp.sum(teacher, axis=0, keepdims=True) * (
        1.0 / float(teacher.shape[0]))
    new_center_ref[...] = (center * center_momentum
                           + batch_center * (1.0 - center_momentum))


# ----------------------------------------------------------------------------
# Tiled path: grid over student crops, pipelined (B, D) student blocks.
# ----------------------------------------------------------------------------
def _dino_loss_tiled_kernel(inv_temp_ref, student_ref, teacher_ref, center_ref,
                            loss_ref, new_center_ref,
                            q_scr, lsum_scr, self0_scr, self1_scr, *,
                            batch_per_crop, ncrops, inv_student_temp,
                            center_momentum):
    B = batch_per_crop
    v = pl.program_id(0)

    @pl.when(v == 0)
    def _init():
        teacher = teacher_ref[...].astype(jnp.float32)        # (2B, D)
        center = center_ref[...].astype(jnp.float32)          # (1, D)
        logits_t = (teacher - center) * inv_temp_ref[0, 0]
        m_t = jnp.max(logits_t, axis=-1, keepdims=True)
        e_t = jnp.exp(logits_t - m_t)
        q_scr[...] = e_t * pl.reciprocal(
            jnp.sum(e_t, axis=-1, keepdims=True), approx=False)
        batch_center = jnp.sum(teacher, axis=0, keepdims=True) * (
            1.0 / float(teacher.shape[0]))
        new_center_ref[...] = (center * center_momentum
                               + batch_center * (1.0 - center_momentum))

    # Student log-softmax for the current crop block.
    s = student_ref[...].astype(jnp.float32) * inv_student_temp   # (B, D)
    m_s = jnp.max(s, axis=-1, keepdims=True)
    z = s - m_s
    lse = jnp.log(jnp.sum(jnp.exp(z), axis=-1, keepdims=True))
    log_p = z - lse                                               # (B, D)

    @pl.when(v == 0)
    def _first_crop():
        lsum_scr[...] = log_p
        self0_scr[...] = jnp.sum(-q_scr[0:B, :] * log_p, axis=-1, keepdims=True)

    @pl.when(v > 0)
    def _accum():
        lsum_scr[...] += log_p

    @pl.when(v == 1)
    def _second_crop():
        self1_scr[...] = jnp.sum(-q_scr[B:2 * B, :] * log_p,
                                 axis=-1, keepdims=True)

    @pl.when(v == ncrops - 1)
    def _finalize():
        q0 = q_scr[0:B, :]
        q1 = q_scr[B:2 * B, :]
        ls = lsum_scr[...]
        cross0 = jnp.sum(-q0 * ls, axis=-1, keepdims=True) - self0_scr[...]
        cross1 = jnp.sum(-q1 * ls, axis=-1, keepdims=True) - self1_scr[...]
        n_terms = 2 * (ncrops - 1)
        loss_ref[0, 0] = jnp.sum(cross0 + cross1) * (1.0 / float(B * n_terms))


# ----------------------------------------------------------------------------
# Wrapper
# ----------------------------------------------------------------------------
def dino_loss(student_output, teacher_output, center, epoch,
              teacher_temp_schedule, *, ncrops,
              student_temp=0.1, center_momentum=0.9, force_tiled=None):
    """Returns (total_loss, updated_center) — mirrors DINOLoss.forward plus
    the update_center buffer side effect (world_size == 1)."""
    two_b, out_dim = teacher_output.shape
    assert two_b % 2 == 0
    B = two_b // 2
    assert ncrops >= 2
    assert student_output.shape == (ncrops * B, out_dim)
    assert center.shape == (1, out_dim)

    temp = jnp.asarray(teacher_temp_schedule, jnp.float32)[epoch]
    inv_temp = (jnp.float32(1.0) / temp).reshape(1, 1)

    in_itemsize = student_output.dtype.itemsize
    min_rows = 8 * (4 // in_itemsize)           # 8 (f32) / 16 (bf16) / 32 (i8)
    tiled_ok = (B % min_rows == 0)

    # Rough f32 working-set estimate for the grid-less path.
    small_bytes = 4 * (3 * student_output.size + 3 * teacher_output.size
                       + 4 * out_dim)
    if force_tiled is None:
        use_tiled = tiled_ok and small_bytes > (8 << 20)
    else:
        use_tiled = bool(force_tiled) and tiled_ok

    kernel_kwargs = dict(
        batch_per_crop=B, ncrops=ncrops,
        inv_student_temp=float(1.0 / student_temp),
        center_momentum=float(center_momentum))

    out_shape = (jax.ShapeDtypeStruct((1, 1), jnp.float32),
                 jax.ShapeDtypeStruct((1, out_dim), jnp.float32))

    if use_tiled:
        est = (2 * B * out_dim * in_itemsize      # student block, 2x buffered
               + 2 * B * out_dim * in_itemsize    # teacher (resident)
               + 2 * B * out_dim * 4              # q scratch
               + 4 * B * out_dim * 4              # lsum scratch + f32 temps
               + 8 * out_dim * 4)                 # center / new_center / misc
        vmem_limit = int(min(max(2 * est, 32 << 20), 48 << 20))
        loss, new_center = pl.pallas_call(
            functools.partial(_dino_loss_tiled_kernel, **kernel_kwargs),
            out_shape=out_shape,
            grid=(ncrops,),
            in_specs=[
                pl.BlockSpec(memory_space=pltpu.MemorySpace.SMEM),   # inv_temp
                pl.BlockSpec((B, out_dim), lambda v: (v, 0)),        # student
                pl.BlockSpec((2 * B, out_dim), lambda v: (0, 0)),    # teacher
                pl.BlockSpec((1, out_dim), lambda v: (0, 0)),        # center
            ],
            out_specs=(
                pl.BlockSpec(memory_space=pltpu.MemorySpace.SMEM),   # loss
                pl.BlockSpec((1, out_dim), lambda v: (0, 0)),        # center'
            ),
            scratch_shapes=[
                pltpu.VMEM((2 * B, out_dim), jnp.float32),           # q
                pltpu.VMEM((B, out_dim), jnp.float32),               # L_sum
                pltpu.VMEM((B, 1), jnp.float32),                     # self0
                pltpu.VMEM((B, 1), jnp.float32),                     # self1
            ],
            compiler_params=pltpu.CompilerParams(
                # "arbitrary": the crop axis carries L_sum / loss accumulation.
                dimension_semantics=("arbitrary",),
                vmem_limit_bytes=vmem_limit),
        )(inv_temp, student_output, teacher_output, center)
    else:
        vmem_limit = int(min(max(2 * small_bytes, 32 << 20), 48 << 20))
        loss, new_center = pl.pallas_call(
            functools.partial(_dino_loss_small_kernel, **kernel_kwargs),
            out_shape=out_shape,
            in_specs=[
                pl.BlockSpec(memory_space=pltpu.MemorySpace.SMEM),   # inv_temp
                pl.BlockSpec(memory_space=pltpu.MemorySpace.VMEM),   # student
                pl.BlockSpec(memory_space=pltpu.MemorySpace.VMEM),   # teacher
                pl.BlockSpec(memory_space=pltpu.MemorySpace.VMEM),   # center
            ],
            out_specs=(
                pl.BlockSpec(memory_space=pltpu.MemorySpace.SMEM),   # loss
                pl.BlockSpec(memory_space=pltpu.MemorySpace.VMEM),   # center'
            ),
            compiler_params=pltpu.CompilerParams(vmem_limit_bytes=vmem_limit),
        )(inv_temp, student_output, teacher_output, center)

    return loss[0, 0], new_center


# ----------------------------------------------------------------------------
# Pure-JAX reference (mirrors the PyTorch forward) for validation.
# ----------------------------------------------------------------------------
def _reference(student_output, teacher_output, center, temp, *, ncrops,
               student_temp, center_momentum):
    B = teacher_output.shape[0] // 2
    s = student_output.astype(jnp.float32) / student_temp
    student_chunks = [s[v * B:(v + 1) * B] for v in range(ncrops)]
    q_all = jax.nn.softmax(
        (teacher_output.astype(jnp.float32) - center) / temp, axis=-1)
    teacher_chunks = [q_all[i * B:(i + 1) * B] for i in range(2)]
    total, n = 0.0, 0
    for iq, q in enumerate(teacher_chunks):
        for v in range(ncrops):
            if v == iq:
                continue
            loss = jnp.sum(-q * jax.nn.log_softmax(student_chunks[v], axis=-1),
                           axis=-1)
            total = total + loss.mean()
            n += 1
    total = total / n
    batch_center = jnp.sum(teacher_output.astype(jnp.float32), axis=0,
                           keepdims=True) / (2 * B)
    new_center = center * center_momentum + batch_center * (1 - center_momentum)
    return total, new_center


if __name__ == "__main__":
    # Module hyper-parameters (deterministic, synthetic, SMALL).
    out_dim = 128
    ncrops = 4
    batch_per_crop = 8
    warmup_teacher_temp = 0.04
    teacher_temp = 0.07
    warmup_teacher_temp_epochs = 3
    nepochs = 10
    student_temp = 0.1
    center_momentum = 0.9
    epoch = 2

    teacher_temp_schedule = np.concatenate((
        np.linspace(warmup_teacher_temp, teacher_temp,
                    warmup_teacher_temp_epochs),
        np.ones(nepochs - warmup_teacher_temp_epochs) * teacher_temp,
    )).astype(np.float32)

    key = jax.random.PRNGKey(0)
    k1, k2 = jax.random.split(key)
    student_output = jax.random.normal(
        k1, (ncrops * batch_per_crop, out_dim), jnp.float32)
    teacher_output = jax.random.normal(
        k2, (2 * batch_per_crop, out_dim), jnp.float32)
    center = jnp.zeros((1, out_dim), jnp.float32)   # register_buffer init

    # Fast (grid-less) path — what small shapes dispatch to.
    loss_s, center_s = dino_loss(
        student_output, teacher_output, center, epoch, teacher_temp_schedule,
        ncrops=ncrops, student_temp=student_temp,
        center_momentum=center_momentum, force_tiled=False)
    # Tiled (gridded) path — the production-size code path.
    loss_t, center_t = dino_loss(
        student_output, teacher_output, center, epoch, teacher_temp_schedule,
        ncrops=ncrops, student_temp=student_temp,
        center_momentum=center_momentum, force_tiled=True)
    jax.block_until_ready((loss_s, center_s, loss_t, center_t))

    ref_loss, ref_center = _reference(
        student_output, teacher_output, center,
        float(teacher_temp_schedule[epoch]),
        ncrops=ncrops, student_temp=student_temp,
        center_momentum=center_momentum)

    assert jnp.allclose(loss_s, ref_loss, rtol=1e-5, atol=1e-5), (loss_s, ref_loss)
    assert jnp.allclose(loss_t, ref_loss, rtol=1e-5, atol=1e-5), (loss_t, ref_loss)
    assert jnp.allclose(center_s, ref_center, rtol=1e-5, atol=1e-6)
    assert jnp.allclose(center_t, ref_center, rtol=1e-5, atol=1e-6)
    print("KERNEL_OK")
</pallas_src>

<mosaic_0001>
module attributes {stable_mosaic.version = 11 : i64} {
  func.func @_dino_loss_small_kernel(%arg0: memref<1x1xf32, #tpu.memory_space<smem>>, %arg1: memref<32x128xf32, #tpu.memory_space<vmem>>, %arg2: memref<16x128xf32, #tpu.memory_space<vmem>>, %arg3: memref<1x128xf32, #tpu.memory_space<vmem>>, %arg4: memref<1x1xf32, #tpu.memory_space<smem>>, %arg5: memref<1x128xf32, #tpu.memory_space<vmem>>) attributes {dimension_semantics = [], scalar_prefetch = 0 : i64, scratch_operands = 0 : i64, tpu.core_type = #tpu.core_type<tc>} {
    %c0 = arith.constant 0 : index
    %c0_0 = arith.constant 0 : index
    %0 = memref.load %arg0[%c0, %c0_0] : memref<1x1xf32, #tpu.memory_space<smem>>
    %c0_1 = arith.constant 0 : index
    %c0_2 = arith.constant 0 : index
    %1 = vector.load %arg2[%c0_1, %c0_2] : memref<16x128xf32, #tpu.memory_space<vmem>>, vector<16x128xf32>
    %c0_3 = arith.constant 0 : index
    %c0_4 = arith.constant 0 : index
    %2 = vector.load %arg3[%c0_3, %c0_4] : memref<1x128xf32, #tpu.memory_space<vmem>>, vector<1x128xf32>
    %3 = vector.broadcast %2 : vector<1x128xf32> to vector<16x128xf32>
    %4 = arith.subf %1, %3 : vector<16x128xf32>
    %5 = vector.broadcast %0 : f32 to vector<16x128xf32>
    %6 = arith.mulf %4, %5 : vector<16x128xf32>
    %cst = arith.constant dense<0xFF800000> : vector<16xf32>
    %7 = vector.multi_reduction <maximumf>, %6, %cst [1] : vector<16x128xf32> to vector<16xf32>
    %8 = vector.shape_cast %7 : vector<16xf32> to vector<16x1xf32>
    %9 = vector.broadcast %8 : vector<16x1xf32> to vector<16x128xf32>
    %10 = arith.subf %6, %9 : vector<16x128xf32>
    %11 = math.exp %10 : vector<16x128xf32>
    %cst_5 = arith.constant dense<0.000000e+00> : vector<16xf32>
    %12 = vector.multi_reduction <add>, %11, %cst_5 [1] : vector<16x128xf32> to vector<16xf32>
    %13 = vector.shape_cast %12 : vector<16xf32> to vector<16x1xf32>
    %14 = tpu.reciprocal %13 : vector<16x1xf32> -> vector<16x1xf32>
    %15 = vector.broadcast %14 : vector<16x1xf32> to vector<16x128xf32>
    %16 = arith.mulf %11, %15 : vector<16x128xf32>
    %c0_6 = arith.constant 0 : index
    %c0_7 = arith.constant 0 : index
    %17 = vector.load %arg1[%c0_6, %c0_7] : memref<32x128xf32, #tpu.memory_space<vmem>>, vector<32x128xf32>
    %cst_8 = arith.constant 1.000000e+01 : f32
    %18 = vector.broadcast %cst_8 : f32 to vector<32x128xf32>
    %19 = arith.mulf %17, %18 : vector<32x128xf32>
    %cst_9 = arith.constant dense<0xFF800000> : vector<32xf32>
    %20 = vector.multi_reduction <maximumf>, %19, %cst_9 [1] : vector<32x128xf32> to vector<32xf32>
    %21 = vector.shape_cast %20 : vector<32xf32> to vector<32x1xf32>
    %22 = vector.broadcast %21 : vector<32x1xf32> to vector<32x128xf32>
    %23 = arith.subf %19, %22 : vector<32x128xf32>
    %24 = math.exp %23 : vector<32x128xf32>
    %cst_10 = arith.constant dense<0.000000e+00> : vector<32xf32>
    %25 = vector.multi_reduction <add>, %24, %cst_10 [1] : vector<32x128xf32> to vector<32xf32>
    %26 = vector.shape_cast %25 : vector<32xf32> to vector<32x1xf32>
    %27 = math.log %26 : vector<32x1xf32>
    %28 = vector.broadcast %27 : vector<32x1xf32> to vector<32x128xf32>
    %29 = arith.subf %23, %28 : vector<32x128xf32>
    %30 = vector.extract_strided_slice %29 {offsets = [0, 0], sizes = [8, 128], strides = [1, 1]} : vector<32x128xf32> to vector<8x128xf32>
    %31 = vector.extract_strided_slice %29 {offsets = [8, 0], sizes = [8, 128], strides = [1, 1]} : vector<32x128xf32> to vector<8x128xf32>
    %32 = arith.addf %30, %31 : vector<8x128xf32>
    %33 = vector.extract_strided_slice %29 {offsets = [16, 0], sizes = [8, 128], strides = [1, 1]} : vector<32x128xf32> to vector<8x128xf32>
    %34 = arith.addf %32, %33 : vector<8x128xf32>
    %35 = vector.extract_strided_slice %29 {offsets = [24, 0], sizes = [8, 128], strides = [1, 1]} : vector<32x128xf32> to vector<8x128xf32>
    %36 = arith.addf %34, %35 : vector<8x128xf32>
    %cst_11 = arith.constant 0.000000e+00 : f32
    %37 = vector.broadcast %cst_11 : f32 to vector<8x1xf32>
    %38 = vector.extract_strided_slice %16 {offsets = [0, 0], sizes = [8, 128], strides = [1, 1]} : vector<16x128xf32> to vector<8x128xf32>
    %39 = vector.extract_strided_slice %29 {offsets = [0, 0], sizes = [8, 128], strides = [1, 1]} : vector<32x128xf32> to vector<8x128xf32>
    %40 = arith.subf %36, %39 : vector<8x128xf32>
    %cst_12 = arith.constant 0.000000e+00 : f32
    %41 = vector.broadcast %cst_12 : f32 to vector<8x128xf32>
    %42 = arith.subf %41, %38 : vector<8x128xf32>
    %43 = arith.mulf %42, %40 : vector<8x128xf32>
    %cst_13 = arith.constant dense<0.000000e+00> : vector<8xf32>
    %44 = vector.multi_reduction <add>, %43, %cst_13 [1] : vector<8x128xf32> to vector<8xf32>
    %45 = vector.shape_cast %44 : vector<8xf32> to vector<8x1xf32>
    %46 = arith.addf %37, %45 : vector<8x1xf32>
    %47 = vector.extract_strided_slice %16 {offsets = [8, 0], sizes = [8, 128], strides = [1, 1]} : vector<16x128xf32> to vector<8x128xf32>
    %48 = vector.extract_strided_slice %29 {offsets = [8, 0], sizes = [8, 128], strides = [1, 1]} : vector<32x128xf32> to vector<8x128xf32>
    %49 = arith.subf %36, %48 : vector<8x128xf32>
    %cst_14 = arith.constant 0.000000e+00 : f32
    %50 = vector.broadcast %cst_14 : f32 to vector<8x128xf32>
    %51 = arith.subf %50, %47 : vector<8x128xf32>
    %52 = arith.mulf %51, %49 : vector<8x128xf32>
    %cst_15 = arith.constant dense<0.000000e+00> : vector<8xf32>
    %53 = vector.multi_reduction <add>, %52, %cst_15 [1] : vector<8x128xf32> to vector<8xf32>
    %54 = vector.shape_cast %53 : vector<8xf32> to vector<8x1xf32>
    %55 = arith.addf %46, %54 : vector<8x1xf32>
    %56 = vector.shape_cast %55 : vector<8x1xf32> to vector<1x8x1xf32>
    %cst_16 = arith.constant dense<0.000000e+00> : vector<1xf32>
    %57 = vector.multi_reduction <add>, %56, %cst_16 [1, 2] : vector<1x8x1xf32> to vector<1xf32>
    %58 = vector.shape_cast %57 : vector<1xf32> to vector<1x1x1xf32>
    %59 = vector.extract %58[0, 0, 0] : f32 from vector<1x1x1xf32>
    %cst_17 = arith.constant 0.020833334 : f32
    %60 = arith.mulf %59, %cst_17 : f32
    %c0_18 = arith.constant 0 : index
    %c0_19 = arith.constant 0 : index
    %61 = memref.load %arg4[%c0_18, %c0_19] : memref<1x1xf32, #tpu.memory_space<smem>>
    memref.store %60, %arg4[%c0_18, %c0_19] : memref<1x1xf32, #tpu.memory_space<smem>>
    %cst_20 = arith.constant dense<0.000000e+00> : vector<128xf32>
    %62 = vector.multi_reduction <add>, %1, %cst_20 [0] : vector<16x128xf32> to vector<128xf32>
    %63 = vector.shape_cast %62 : vector<128xf32> to vector<1x128xf32>
    %cst_21 = arith.constant 6.250000e-02 : f32
    %64 = vector.broadcast %cst_21 : f32 to vector<1x128xf32>
    %65 = arith.mulf %63, %64 : vector<1x128xf32>
    %cst_22 = arith.constant 0.899999976 : f32
    %66 = vector.broadcast %cst_22 : f32 to vector<1x128xf32>
    %67 = arith.mulf %2, %66 : vector<1x128xf32>
    %cst_23 = arith.constant 1.000000e-01 : f32
    %68 = vector.broadcast %cst_23 : f32 to vector<1x128xf32>
    %69 = arith.mulf %65, %68 : vector<1x128xf32>
    %70 = arith.addf %67, %69 : vector<1x128xf32>
    %c0_24 = arith.constant 0 : index
    %c0_25 = arith.constant 0 : index
    %71 = vector.load %arg5[%c0_24, %c0_25] : memref<1x128xf32, #tpu.memory_space<vmem>>, vector<1x128xf32>
    tpu.vector_store %arg5[%c0_24, %c0_25], %70 {strides = array<i32>} : memref<1x128xf32, #tpu.memory_space<vmem>>, vector<1x128xf32>,
    return
  }
}

</mosaic_0001>

<bundles_post_ra>
// kernel: tpu_custom_call.1
= control target key start
LH: loop header
LB: loop body
LE: loop exit
PB: predicated region body
PF: predicated region fallthrough
CT: control target
= control target key end

     0   :  { %12 = vsyncpa [#allocation4], 0  ;;  %s415_s0 = inlined_call_operand.<no memory space> [shape: f32[1,1], index: 0, kind: input, shape index: {}]   ;;  %s416_s1 = inlined_call_operand.hbm [shape: f32[32,128], index: 1, kind: input, shape index: {}]   ;;  %s417_s2 = inlined_call_operand.hbm [shape: f32[16,128], index: 2, kind: input, shape index: {}]   ;;  %s418_s3 = inlined_call_operand.vmem [shape: f32[1,128], index: 3, kind: input, shape index: {}]   ;;  %s419_s4 = inlined_call_operand.hbm [shape: f32[1,1], index: 4, kind: output, shape index: {0}]   ;;  %s420_s5 = inlined_call_operand.hbm [shape: f32[1,128], index: 5, kind: output, shape index: {1}]  }
   0x1   :  { %13 = vsyncpa [#allocation8], 0 }
   0x2   :  { %14 = vsyncpa [#allocation6], 0 }
   0x3   :  { %15 = vsyncpa [#allocation5], 0  ;;  %s317_s18 = smov [#allocation3]   ;;  %s233_s22 = scalar_lea.hbm %s416_s1, 512 }
   0x4   :  { %s23_s19 = sshll.u32 %s317_s18, 4  ;;  %p234_p0 = scmp.ne.s32.totalorder %s416_s1, %s233_s22  ;;  %s24_s19 = int_to_ptr.vmem [resolvable:$true] %s23_s19 }
   0x5   :  { %p237_p1 = scmp.lt.u32.totalorder %s233_s22, %s416_s1 }
   0x7   :  { %p239_p2 = pnand %p237_p1, %p234_p0 }
   0x9   :  { %242 = shalt.err (!%p239_p2)
}
   0xa   :  { %s243_s27 = scalar_lea.vmem %s24_s19, 512  ;;  %p248_p4 = scmp.lt.s32.totalorder %s24_s19, %s24_s19 }
   0xb   :  { %p244_p3 = scmp.ne.s32.totalorder %s24_s19, %s243_s27  ;;  %p249_p5 = scmp.lt.s32.totalorder %s243_s27, %s243_s27 }
   0xd   :  { %p250_p6 = por %p249_p5, %p248_p4 }
   0xf   :  { %p251_p7 = pnand %p250_p6, %p244_p3 }
  0x11   :  { %254 = shalt.err (!%p251_p7)
}
  0x12   :  { %s318_s28 = smov 128   ;;  %s319_s29 = smov 8  }
  0x13   :  { %29 = dma.hbm_to_vmem [thread:$0]  %s416_s1, 512, %s24_s19, [#allocation4], %s318_s28, %s318_s28, %s319_s29  }
  0x14   :  { %s320_s7 = smov [#allocation7]   ;;  %s255_s11 = scalar_lea.hbm %s417_s2, 256 }
  0x15   :  { %s35_s8 = sshll.u32 %s320_s7, 4  ;;  %p256_p8 = scmp.ne.s32.totalorder %s417_s2, %s255_s11  ;;  %s36_s8 = int_to_ptr.vmem [resolvable:$true] %s35_s8 }
  0x16   :  { %p259_p9 = scmp.lt.u32.totalorder %s255_s11, %s417_s2 }
  0x18   :  { %p261_p10 = pnand %p259_p9, %p256_p8 }
  0x1a   :  { %264 = shalt.err (!%p261_p10)
}
  0x1b   :  { %s265_s16 = scalar_lea.vmem %s36_s8, 256  ;;  %p270_p12 = scmp.lt.s32.totalorder %s36_s8, %s36_s8 }
  0x1c   :  { %p266_p11 = scmp.ne.s32.totalorder %s36_s8, %s265_s16  ;;  %p271_p13 = scmp.lt.s32.totalorder %s265_s16, %s265_s16 }
  0x1e   :  { %p272_p0 = por %p271_p13, %p270_p12 }
  0x20   :  { %p273_p1 = pnand %p272_p0, %p266_p11 }
  0x22   :  { %276 = shalt.err (!%p273_p1)
}
  0x23   :  { %41 = dma.hbm_to_vmem [thread:$0]  %s417_s2, 256, %s36_s8, [#allocation8], %s318_s28, %s318_s28, %s319_s29  }
  0x24   :  { %309 = dma.done.wait [#allocation4], 512  }
  0x25   :  { %310 = vsyncadd [#allocation4], 4294966784 }
  0x26   :  { %311 = dma.done.wait [#allocation8], 256  }
  0x27   :  { %312 = vsyncadd [#allocation8], 4294967040  ;;  %v55_v0 = vlaneseq  ;;  %v83_v3 = vld [vmem:[#allocation3] sm:$0xff]  ;;  %v85_v4 = vld [vmem:[#allocation3 + $0x10] sm:$0xff]  ;;  %v62_v16 = vstv %s415_s0  ;;  %vm146_vm0 = vcmask 7168   ;;  %s321_s0 = smov [#allocation10]  }
  0x28   :  { %v84_v5 = vld [vmem:[#allocation3 + $0x8] sm:$0xff]  ;;  %v87_v6 = vmul.f32 10.0, %v83_v3  ;;  %v89_v7 = vmul.f32 10.0, %v85_v4  ;;  %v86_v8 = vld [vmem:[#allocation3 + $0x18] sm:$0xff]  ;;  %v51_v9 = vld [vmem:[#allocation7] sm:$0xff] }
  0x29   :  { %v56_v1 = vshrl.u32 %v55_v0, 7  ;;  %v52_v10 = vld [vmem:[#allocation7 + $0x8] sm:$0xff]  ;;  %v380_v11 = vld [vmem:[%s418_s3] sm:$0x1]  ;;  %v88_v13 = vmul.f32 10.0, %v84_v5  ;;  %v90_v14 = vmul.f32 10.0, %v86_v8 }
  0x2a   :  { %v382_v12 = vadd.f32 %v52_v10, %v51_v9  ;;  %91 = vmax.xlane.f32.xlu0 %v87_v6  ;;  %95 = vmax.xlane.f32.xlu1 %v89_v7  ;;  %s186_s3 = sshll.u32 %s321_s0, 4  ;;  %s187_s3 = int_to_ptr.vmem [resolvable:$true] %s186_s3 }
  0x2b   :  { %v57_v2 = vsub.s32 0, %v56_v1  ;;  %s277_s21 = scalar_lea.vmem %s187_s3, 16  ;;  %s281_s22 = scalar_lea.vmem %s187_s3, 32 }
  0x2c   :  { %p278_p2 = scmp.ne.s32.totalorder %s187_s3, %s277_s21  ;;  %p282_p3 = scmp.lt.s32.totalorder %s187_s3, %s187_s3 }
  0x2d   :  { %v58_v15 = vrot.slane %v380_v11, %v57_v2  ;;  %p283_p4 = scmp.lt.s32.totalorder %s281_s22, %s277_s21 }
  0x2e   :  { %93 = vmax.xlane.f32.xlu0 %v88_v13  ;;  %97 = vmax.xlane.f32.xlu1 %v90_v14 }
  0x2f   :  { %v60_v17 = vsub.f32 %v51_v9, %v58_v15  ;;  %v61_v18 = vsub.f32 %v52_v10, %v58_v15  ;;  %p284_p5 = por %p283_p4, %p282_p3 }
  0x31   :  { %v63_v19 = vmul.f32 %v62_v16, %v60_v17  ;;  %v64_v20 = vmul.f32 %v62_v16, %v61_v18  ;;  %v161_v18 = vrot.slane %v382_v12, 4  ;;  %p285_p6 = pnand %p284_p5, %p278_p2 }
  0x33   :  { %65 = vmax.xlane.f32.xlu0 %v63_v19  ;;  %67 = vmax.xlane.f32.xlu1 %v64_v20 }
  0xb7   :  { %v92_v21 = vpop.xlane.xlu0 %91  ;;  %v96_v22 = vpop.xlane.xlu1 %95 }
  0xb8   :  { %v99_v23 = vsub.f32 %v87_v6, %v92_v21  ;;  %v101_v24 = vsub.f32 %v89_v7, %v96_v22 }
  0xba   :  { %v103_v25 = vmul.f32 1.442695, %v99_v23  ;;  %v107_v26 = vmul.f32 1.442695, %v101_v24 }
  0xbb   :  { %v94_v27 = vpop.xlane.xlu0 %93  ;;  %v98_v28 = vpop.xlane.xlu1 %97 }
  0xbc   :  { %209 = vpow2.f32 %v103_v25  ;;  %v100_v29 = vsub.f32 %v88_v13, %v94_v27  ;;  %v102_v30 = vsub.f32 %v90_v14, %v98_v28  ;;  %v168_v25 = vmul.f32 0.9, %v380_v11 }
  0xbd   :  { %211 = vpow2.f32 %v107_v26 }
  0xbe   :  { %v105_v31 = vmul.f32 1.442695, %v100_v29  ;;  %v109_v32 = vmul.f32 1.442695, %v102_v30 }
  0xc0   :  { %v66_v33 = vpop.xlane.xlu0 %65  ;;  %v68_v34 = vpop.xlane.xlu1 %67  ;;  %213 = vpow2.f32 %v105_v31 }
  0xc1   :  { %v69_v35 = vsub.f32 %v63_v19, %v66_v33  ;;  %v70_v36 = vsub.f32 %v64_v20, %v68_v34  ;;  %215 = vpow2.f32 %v109_v32  ;;  %v162_v19 = vadd.f32 %v161_v18, %v382_v12 }
  0xc3   :  { %v71_v37 = vmul.f32 1.442695, %v69_v35  ;;  %v73_v38 = vmul.f32 1.442695, %v70_v36  ;;  %v163_v20 = vrot.slane %v162_v19, 2 }
  0xc5   :  { %217 = vpow2.f32 %v71_v37  ;;  %v164_v21 = vadd.f32 %v163_v20, %v162_v19 }
  0xc6   :  { %v210_v39 = vpop.eup %209  ;;  %219 = vpow2.f32 %v73_v38 }
  0xc7   :  { %111 = vadd.xlane.f32.xlu0 %v210_v39  ;;  %v212_v40 = vpop.eup %211  ;;  %v165_v22 = vrot.slane %v164_v21, 1 }
  0xca   :  { %v214_v41 = vpop.eup %213 }
  0xcb   :  { %113 = vadd.xlane.f32.xlu1 %v214_v41  ;;  %115 = vadd.xlane.f32.xlu0 %v212_v40  ;;  %v216_v42 = vpop.eup %215 }
  0xcf   :  { %v218_v43 = vpop.eup %217  ;;  %117 = vadd.xlane.f32.xlu1 %v216_v42 }
  0xd0   :  { %75 = vadd.xlane.f32.xlu0 %v218_v43  ;;  %v220_v44 = vpop.eup %219 }
  0xd3   :  { %77 = vadd.xlane.f32.xlu1 %v220_v44 }
 0x154   :  { %v112_v45 = vpop.xlane.xlu0 %111 }
 0x155   :  { %221 = vlog2.f32 %v112_v45 }
 0x158   :  { %v114_v46 = vpop.xlane.xlu1 %113  ;;  %v116_v47 = vpop.xlane.xlu0 %115 }
 0x159   :  { %223 = vlog2.f32 %v114_v46 }
 0x15a   :  { %225 = vlog2.f32 %v116_v47 }
 0x15c   :  { %v118_v48 = vpop.xlane.xlu1 %117 }
 0x15d   :  { %v76_v49 = vpop.xlane.xlu0 %75  ;;  %227 = vlog2.f32 %v118_v48 }
 0x15e   :  { %229 = vrcp.f32 %v76_v49 }
 0x15f   :  { %v222_v50 = vpop.eup %221 }
 0x160   :  { %v78_v51 = vpop.xlane.xlu1 %77  ;;  %v120_v52 = vmul.f32 0.6931472, %v222_v50 }
 0x161   :  { %231 = vrcp.f32 %v78_v51 }
 0x162   :  { %v127_v57 = vsub.f32 %v99_v23, %v120_v52  ;;  %v166_v23 = vadd.f32 %v165_v22, %v164_v21 }
 0x163   :  { %v224_v53 = vpop.eup %223 }
 0x164   :  { %v226_v54 = vpop.eup %225  ;;  %v122_v55 = vmul.f32 0.6931472, %v224_v53 }
 0x165   :  { %v124_v56 = vmul.f32 0.6931472, %v226_v54 }
 0x166   :  { %v128_v58 = vsub.f32 %v100_v29, %v122_v55 }
 0x167   :  { %v228_v59 = vpop.eup %227  ;;  %v129_v62 = vsub.f32 %v101_v24, %v124_v56  ;;  %v167_v24 = vmul.f32 0.0625, %v166_v23 }
 0x168   :  { %v230_v60 = vpop.eup %229  ;;  %v131_v61 = vadd.f32 %v128_v58, %v127_v57  ;;  %v126_v63 = vmul.f32 0.6931472, %v228_v59 }
 0x169   :  { %v81_v2 = vmul.f32 %v230_v60, %v218_v43  ;;  %v169_v26 = vmul.f32 0.1, %v167_v24 }
 0x16a   :  { %v132_v0 = vadd.f32 %v131_v61, %v129_v62  ;;  %v130_v1 = vsub.f32 %v102_v30, %v126_v63 }
 0x16b   :  { %v232_v3 = vpop.eup %231  ;;  %v135_v9 = vsub.f32 0.0, %v81_v2  ;;  %v170_v27 = vadd.f32 %v169_v26, %v168_v25 }
 0x16c   :  { %v82_v4 = vmul.f32 %v232_v3, %v220_v44  ;;  %v133_v5 = vadd.f32 %v132_v0, %v130_v1 }
 0x16d   :  { %171 = vst [vmem:[#allocation10] sm:$0x1] %v170_v27 }
 0x16e   :  { %v140_v6 = vsub.f32 %v133_v5, %v128_v58  ;;  %v141_v7 = vsub.f32 0.0, %v82_v4  ;;  %v134_v8 = vsub.f32 %v133_v5, %v127_v57 }
 0x170   :  { %v142_v10 = vmul.f32 %v141_v7, %v140_v6  ;;  %v136_v13 = vmul.f32 %v135_v9, %v134_v8 }
 0x172   :  { %143 = vadd.xlane.f32.xlu1 %v142_v10  ;;  %137 = vadd.xlane.f32.xlu0 %v136_v13 }
 0x1ff   :  { %v144_v14 = vpop.xlane.xlu1 %143  ;;  %v138_v15 = vpop.xlane.xlu0 %137 }
 0x200   :  { %v145_v16 = vadd.f32 %v144_v14, %v138_v15 }
 0x202   :  { %v147_v17 = vsel %vm146_vm0, %v145_v16, 0.0 }
 0x203   :  { %148 = vadd.xlane.f32.xlu0 %v147_v17 }
 0x204   :  { %288 = shalt.err (!%p285_p6)
}
 0x205   :  { %s289_s25 = scalar_lea.hbm %s420_s5, 16 }
 0x206   :  { %p290_p7 = scmp.ne.s32.totalorder %s420_s5, %s289_s25  ;;  %p293_p8 = scmp.lt.u32.totalorder %s289_s25, %s420_s5 }
 0x208   :  { %p295_p9 = pnand %p293_p8, %p290_p7 }
 0x20a   :  { %298 = shalt.err (!%p295_p9)
}
 0x20b   :  { %189 = dma.vmem_to_hbm [thread:$0]  %s187_s3, 16, %s420_s5, [#allocation5]  }
 0x20c   :  { %s299_s11 = scalar_lea.hbm %s419_s4, 16 }
 0x20d   :  { %p300_p10 = scmp.ne.s32.totalorder %s419_s4, %s299_s11  ;;  %p303_p11 = scmp.lt.u32.totalorder %s299_s11, %s419_s4 }
 0x20f   :  { %p305_p12 = pnand %p303_p11, %p300_p10 }
 0x290   :  { %v149_v11 = vpop.xlane.xlu0 %148 }
 0x291   :  { %v150_v12 = vrot.slane %v149_v11, 4 }
 0x293   :  { %v151_v28 = vadd.f32 %v150_v12, %v149_v11 }
 0x295   :  { %v152_v29 = vrot.slane %v151_v28, 2 }
 0x297   :  { %v153_v30 = vadd.f32 %v152_v29, %v151_v28 }
 0x299   :  { %v154_v31 = vrot.slane %v153_v30, 1 }
 0x29b   :  { %v155_v32 = vadd.f32 %v154_v31, %v153_v30 }
 0x29d   :  { %201 = vpush %v155_v32 }
 0x2ce   :  { %s202_s7 = spop %201 }
 0x2cf   :  { %s157_s8 = smul.f32 0.020833334, %s202_s7 }
 0x2d1   :  { %159 = sst [smem:[#allocation9]] %s157_s8 }
 0x2d2   :  { %308 = shalt.err (!%p305_p12)
}
 0x2d3   :  { %s322_s15 = smov [#allocation9]  }
 0x2d4   :  { %179 = dma.smem_to_hbm %s322_s15, 16, %s419_s4, [#allocation6]  }
 0x2d5   :  { %313 = dma.done.wait [#allocation6], 16  }
 0x2d6   :  { %314 = vsyncadd [#allocation6], 4294967280 }
 0x2d7   :  { %315 = dma.done.wait [#allocation5], 16  }
 0x2d8   :  { %316 = vsyncadd [#allocation5], 4294967280 }
 0x2d9   :  { %196 = sfence }
 0x2da   :  { %197 = vsyncpa [#allocation4], 1 }
 0x2db   :  { %198 = vsyncpa [#allocation8], 1 }
 0x2dc   :  { %199 = vsyncpa [#allocation5], 1 }
 0x2dd   :  { %200 = vsyncpa [#allocation6], 1 }

</bundles_post_ra>
